<compile_context>
chip_gen: v6e
topology: v6e:2x2x1
jax: 0.10.0
libtpu: 0.0.40
codegen_flags: <defaults>
</compile_context>

<pallas_src>
import functools

import jax
import jax.numpy as jnp
from jax.experimental import pallas as pl
from jax.experimental.pallas import tpu as pltpu


LANE = 128  # TPU lane width; class dim is padded to a multiple of this.


def _round_up(x, m):
    return (x + m - 1) // m * m


# ------------------------------ Pallas kernel ------------------------------ #

def ppnp_fused_kernel(x_ref, w0_ref, w1_ref, w2_ref, ppr_rows_ref, out_ref,
                      *, num_classes):
    """Fused PPNP forward.

      logits = relu(relu(x@W0)@W1)@W2_pad      (MLP, MXU)
      scores = PPR[idx] @ logits               (gather-first exact-PPR propagation;
                                                the M-row gather happened in the wrapper)
      out    = log_softmax over the first `num_classes` lanes, stored lane-dense.
    """
    # ---- MLP feature transform over all N nodes ----
    h = jnp.dot(x_ref[...], w0_ref[...], preferred_element_type=jnp.float32)
    h = jnp.maximum(h, 0.0)
    h = jnp.dot(h, w1_ref[...], preferred_element_type=jnp.float32)
    h = jnp.maximum(h, 0.0)
    logits = jnp.dot(h, w2_ref[...], preferred_element_type=jnp.float32)        # [N, Cp]

    # ---- Exact-PPR propagation restricted to the M gathered rows ----
    scores = jnp.dot(ppr_rows_ref[...], logits,
                     preferred_element_type=jnp.float32)                        # [M, Cp]

    # ---- log_softmax over the valid class lanes (padded lanes masked out) ----
    class_id = jax.lax.broadcasted_iota(jnp.int32, scores.shape, 1)
    scores = jnp.where(class_id < num_classes, scores, jnp.float32(-1e30))
    mx = jnp.max(scores, axis=-1, keepdims=True)
    shifted = scores - mx
    lse = jnp.log(jnp.sum(jnp.exp(shifted), axis=-1, keepdims=True))
    out_ref[...] = shifted - lse          # full [M, Cp] tile -> unmasked, lane-dense store


# ------------------------------ Host wrapper ------------------------------- #

@jax.jit
def ppnp_forward(x, w0, w1, w2, ppr, idx):
    n, f = x.shape
    h0 = w0.shape[1]
    h1 = w1.shape[1]
    c = w2.shape[1]
    m = idx.shape[0]
    c_pad = _round_up(c, LANE)

    # Zero-pad the class columns of W2 so every downstream matmul / store is 128-lane
    # dense; padded logits columns stay exactly zero and are masked before the softmax.
    w2p = jnp.pad(w2, ((0, 0), (0, c_pad - c)))

    # Gather-first: pull only the M needed PPR rows here (tiny XLA gather) so the kernel
    # never sees the full N x N PPR matrix or the idx vector.
    ppr_rows = ppr[idx]                                    # [M, N] f32

    flops = 2 * (n * f * h0 + n * h0 * h1 + n * h1 * c_pad + m * n * c_pad)
    transcendentals = m * c_pad + m                        # exp + log
    bytes_accessed = 4 * (n * f + f * h0 + h0 * h1 + h1 * c_pad
                          + m * n + m * c_pad)

    vmem_spec = pl.BlockSpec(memory_space=pltpu.MemorySpace.VMEM)
    out_pad = pl.pallas_call(
        functools.partial(ppnp_fused_kernel, num_classes=c),
        out_shape=jax.ShapeDtypeStruct((m, c_pad), jnp.float32),
        in_specs=[vmem_spec] * 5,
        out_specs=vmem_spec,
        cost_estimate=pl.CostEstimate(
            flops=flops,
            transcendentals=transcendentals,
            bytes_accessed=bytes_accessed,
        ),
    )(x, w0, w1, w2p, ppr_rows)
    return out_pad[:, :c]


# ------------------------- Deterministic setup glue ------------------------ #

def build_ppr_exact(key, n, alpha=0.1):
    """PPR_exact = alpha * (I - (1-alpha) * D^-1/2 (A+I) D^-1/2)^-1 (glue, not hot path)."""
    a = (jax.random.uniform(key, (n, n)) < 0.08).astype(jnp.float32)
    a = jnp.maximum(a, a.T)                               # symmetric
    a = a * (1.0 - jnp.eye(n)) + jnp.eye(n)               # self loops
    d_inv_sqrt = 1.0 / jnp.sqrt(jnp.sum(a, axis=-1))
    a_hat = a * d_inv_sqrt[:, None] * d_inv_sqrt[None, :]
    return alpha * jnp.linalg.inv(jnp.eye(n) - (1.0 - alpha) * a_hat)


def jax_reference(x, w0, w1, w2, ppr, idx):
    h = jnp.maximum(x @ w0, 0.0)
    h = jnp.maximum(h @ w1, 0.0)
    logits = h @ w2
    final = ppr[idx] @ logits
    return jax.nn.log_softmax(final, axis=-1)


if __name__ == "__main__":
    # Small shapes consistent with the module: N nodes, F features, hidden [32,16], C classes.
    N, F, H0, H1, C, M = 64, 32, 32, 16, 8, 16

    key = jax.random.PRNGKey(0)
    kx, k0, k1, k2, ka, ki = jax.random.split(key, 6)

    x = jax.random.normal(kx, (N, F), dtype=jnp.float32)
    # Deterministic weight init (He-style scaling); stored as [in, out] so y = x @ W.
    w0 = jax.random.normal(k0, (F, H0), dtype=jnp.float32) * (2.0 / F) ** 0.5
    w1 = jax.random.normal(k1, (H0, H1), dtype=jnp.float32) * (2.0 / H0) ** 0.5
    w2 = jax.random.normal(k2, (H1, C), dtype=jnp.float32) * (2.0 / H1) ** 0.5

    ppr = build_ppr_exact(ka, N, alpha=0.1).astype(jnp.float32)
    idx = jax.random.permutation(ki, N)[:M].astype(jnp.int32)

    out = ppnp_forward(x, w0, w1, w2, ppr, idx)
    out = jax.block_until_ready(out)

    ref = jax_reference(x, w0, w1, w2, ppr, idx)
    assert out.shape == (M, C)
    assert jnp.allclose(out, ref, atol=1e-4, rtol=1e-4), "mismatch vs JAX reference"

    # TODO(synk): sparse attr_matrix / MixedLinear sparse matmul is materialized densely;
    # dropout omitted since the drop_prob=0 path in the reference module is the identity.
    print("KERNEL_OK")
</pallas_src>

<mosaic_0001>
module attributes {stable_mosaic.version = 11 : i64} {
  func.func @ppnp_fused_kernel(%arg0: memref<64x32xf32, #tpu.memory_space<vmem>>, %arg1: memref<32x32xf32, #tpu.memory_space<vmem>>, %arg2: memref<32x16xf32, #tpu.memory_space<vmem>>, %arg3: memref<16x128xf32, #tpu.memory_space<vmem>>, %arg4: memref<16x64xf32, #tpu.memory_space<vmem>>, %arg5: memref<16x128xf32, #tpu.memory_space<vmem>>) attributes {dimension_semantics = [], scalar_prefetch = 0 : i64, scratch_operands = 0 : i64, tpu.core_type = #tpu.core_type<tc>} {
    %c0 = arith.constant 0 : index
    %c0_0 = arith.constant 0 : index
    %0 = vector.load %arg0[%c0, %c0_0] : memref<64x32xf32, #tpu.memory_space<vmem>>, vector<64x32xf32>
    %c0_1 = arith.constant 0 : index
    %c0_2 = arith.constant 0 : index
    %1 = vector.load %arg1[%c0_1, %c0_2] : memref<32x32xf32, #tpu.memory_space<vmem>>, vector<32x32xf32>
    %cst = arith.constant dense<0.000000e+00> : vector<64x32xf32>
    %2 = tpu.matmul %0, %1, %cst {dimension_numbers = #tpu.dot_dimension_numbers<[1], [0], [0], [1], [0, 0, 1, 1], [], []>} : vector<64x32xf32>, vector<32x32xf32>, vector<64x32xf32> -> vector<64x32xf32>
    %cst_3 = arith.constant 0.000000e+00 : f32
    %3 = vector.broadcast %cst_3 : f32 to vector<64x32xf32>
    %4 = arith.maximumf %2, %3 : vector<64x32xf32>
    %c0_4 = arith.constant 0 : index
    %c0_5 = arith.constant 0 : index
    %5 = vector.load %arg2[%c0_4, %c0_5] : memref<32x16xf32, #tpu.memory_space<vmem>>, vector<32x16xf32>
    %cst_6 = arith.constant dense<0.000000e+00> : vector<64x16xf32>
    %6 = tpu.matmul %4, %5, %cst_6 {dimension_numbers = #tpu.dot_dimension_numbers<[1], [0], [0], [1], [0, 0, 1, 1], [], []>} : vector<64x32xf32>, vector<32x16xf32>, vector<64x16xf32> -> vector<64x16xf32>
    %cst_7 = arith.constant 0.000000e+00 : f32
    %7 = vector.broadcast %cst_7 : f32 to vector<64x16xf32>
    %8 = arith.maximumf %6, %7 : vector<64x16xf32>
    %c0_8 = arith.constant 0 : index
    %c0_9 = arith.constant 0 : index
    %9 = vector.load %arg3[%c0_8, %c0_9] : memref<16x128xf32, #tpu.memory_space<vmem>>, vector<16x128xf32>
    %cst_10 = arith.constant dense<0.000000e+00> : vector<64x128xf32>
    %10 = tpu.matmul %8, %9, %cst_10 {dimension_numbers = #tpu.dot_dimension_numbers<[1], [0], [0], [1], [0, 0, 1, 1], [], []>} : vector<64x16xf32>, vector<16x128xf32>, vector<64x128xf32> -> vector<64x128xf32>
    %c0_11 = arith.constant 0 : index
    %c0_12 = arith.constant 0 : index
    %11 = vector.load %arg4[%c0_11, %c0_12] : memref<16x64xf32, #tpu.memory_space<vmem>>, vector<16x64xf32>
    %cst_13 = arith.constant dense<0.000000e+00> : vector<16x128xf32>
    %12 = tpu.matmul %11, %10, %cst_13 {dimension_numbers = #tpu.dot_dimension_numbers<[1], [0], [0], [1], [0, 0, 1, 1], [], []>} : vector<16x64xf32>, vector<64x128xf32>, vector<16x128xf32> -> vector<16x128xf32>
    %13 = tpu.iota {dimensions = array<i32: 1>} : vector<16x128xi32>
    %c8_i32 = arith.constant 8 : i32
    %14 = vector.broadcast %c8_i32 : i32 to vector<16x128xi32>
    %15 = arith.cmpi slt, %13, %14 : vector<16x128xi32>
    %cst_14 = arith.constant -1.000000e+30 : f32
    %16 = vector.broadcast %cst_14 : f32 to vector<16x128xf32>
    %17 = arith.select %15, %12, %16 : vector<16x128xi1>, vector<16x128xf32>
    %cst_15 = arith.constant dense<0xFF800000> : vector<16xf32>
    %18 = vector.multi_reduction <maximumf>, %17, %cst_15 [1] : vector<16x128xf32> to vector<16xf32>
    %19 = vector.shape_cast %18 : vector<16xf32> to vector<16x1xf32>
    %20 = vector.broadcast %19 : vector<16x1xf32> to vector<16x128xf32>
    %21 = arith.subf %17, %20 : vector<16x128xf32>
    %22 = math.exp %21 : vector<16x128xf32>
    %cst_16 = arith.constant dense<0.000000e+00> : vector<16xf32>
    %23 = vector.multi_reduction <add>, %22, %cst_16 [1] : vector<16x128xf32> to vector<16xf32>
    %24 = vector.shape_cast %23 : vector<16xf32> to vector<16x1xf32>
    %25 = math.log %24 : vector<16x1xf32>
    %26 = vector.broadcast %25 : vector<16x1xf32> to vector<16x128xf32>
    %27 = arith.subf %21, %26 : vector<16x128xf32>
    %c0_17 = arith.constant 0 : index
    %c0_18 = arith.constant 0 : index
    %28 = vector.load %arg5[%c0_17, %c0_18] : memref<16x128xf32, #tpu.memory_space<vmem>>, vector<16x128xf32>
    tpu.vector_store %arg5[%c0_17, %c0_18], %27 {strides = array<i32>} : memref<16x128xf32, #tpu.memory_space<vmem>>, vector<16x128xf32>,
    return
  }
}

</mosaic_0001>

<bundles_post_ra>
// kernel: ppnp_forward.1
= control target key start
LH: loop header
LB: loop body
LE: loop exit
PB: predicated region body
PF: predicated region fallthrough
CT: control target
= control target key end

     0   :  { %vm32_vm0 = vcmask 261120   ;;  %vm313_vm1 = vcmask 130048   ;;  %vm445_vm2 = vcmask 523264   ;;  %v527_v60 = vlaneseq  ;;  %s833_s1 = inlined_call_operand.vmem [shape: f32[32,32], index: 1, kind: input, shape index: {}]   ;;  %s834_s0 = inlined_call_operand.vmem [shape: f32[64,32], index: 0, kind: input, shape index: {}]   ;;  %s835_s2 = inlined_call_operand.vmem [shape: f32[32,16], index: 2, kind: input, shape index: {}]   ;;  %s836_s3 = inlined_call_operand.vmem [shape: f32[16,128], index: 3, kind: input, shape index: {}]   ;;  %s837_s4 = inlined_call_operand.vmem [shape: f32[16,64], index: 4, kind: input, shape index: {}]   ;;  %s838_s5 = inlined_call_operand.vmem [shape: f32[16,128], index: 5, kind: output, shape index: {}]  }
   0x1   :  { %v31_v0 = vld [vmem:[%s833_s1 + $0x18] sm:$0xff]  ;;  %v30_v1 = vld [vmem:[%s833_s1 + $0x10] sm:$0xff]  ;;  %v20_v2 = vld [vmem:[%s834_s0] sm:$0xff] }
   0x2   :  { %628 = vmatprep.subr.mxu0 %v31_v0  ;;  %v29_v3 = vld [vmem:[%s833_s1 + $0x8] sm:$0xff]  ;;  %636 = vmatprep.mubr.msk.f32.mxu0 %vm32_vm0, %v20_v2  ;;  %v28_v4 = vld [vmem:[%s833_s1] sm:$0xff]  ;;  %v173_v5 = vld [vmem:[%s835_s2 + $0x18] sm:$0xff]  ;;  %v528_v61 = vand.u32 127, %v527_v60 }
   0x3   :  { %629 = vmatpush3.msra.mxu0 %v31_v0  ;;  %648 = vmatprep.subr.mxu1 %v173_v5  ;;  %v21_v6 = vld [vmem:[%s834_s0 + $0x8] sm:$0xff]  ;;  %v22_v7 = vld [vmem:[%s834_s0 + $0x10] sm:$0xff]  ;;  %v23_v8 = vld [vmem:[%s834_s0 + $0x18] sm:$0xff] }
   0x4   :  { %630 = vmatprep.subr.mxu0 %v30_v1  ;;  %649 = vmatpush3.msra.mxu1 %v173_v5  ;;  %v24_v9 = vld [vmem:[%s834_s0 + $0x20] sm:$0xff]  ;;  %v25_v10 = vld [vmem:[%s834_s0 + $0x28] sm:$0xff]  ;;  %v26_v11 = vld [vmem:[%s834_s0 + $0x30] sm:$0xff]  ;;  %vm529_vm3 = vcmp.lt.s32.totalorder %v528_v61, 8 }
   0x5   :  { %631 = vmatpush3.msra.mxu0 %v30_v1  ;;  %v27_v12 = vld [vmem:[%s834_s0 + $0x38] sm:$0xff]  ;;  %v172_v13 = vld [vmem:[%s835_s2 + $0x10] sm:$0xff]  ;;  %v171_v14 = vld [vmem:[%s835_s2 + $0x8] sm:$0xff] }
   0x6   :  { %632 = vmatprep.subr.mxu0 %v29_v3  ;;  %650 = vmatprep.subr.mxu1 %v172_v13  ;;  %v170_v15 = vld [vmem:[%s835_s2] sm:$0xff]  ;;  %v312_v16 = vld [vmem:[%s836_s3 + $0x8] sm:$0xff] }
   0x7   :  { %633 = vmatpush3.msra.mxu0 %v29_v3  ;;  %651 = vmatpush3.msra.mxu1 %v172_v13  ;;  %v311_v17 = vld [vmem:[%s836_s3] sm:$0xff]  ;;  %v444_v59 = vld [vmem:[%s837_s4 + $0x8] sm:$0xff] }
   0x8   :  { %634 = vmatprep.subr.mxu0 %v28_v4  ;;  %652 = vmatprep.subr.mxu1 %v171_v14  ;;  %v443_v50 = vld [vmem:[%s837_s4] sm:$0xff] }
   0x9   :  { %635 = vmatpush3.msra.mxu0 %v28_v4  ;;  %653 = vmatpush3.msra.mxu1 %v171_v14 }
   0xa   :  { %637 = vmatmul.mubr.msk.f32.vlgmr.msra.gmra.mxu0 %vm32_vm0, %v21_v6  ;;  %654 = vmatprep.subr.mxu1 %v170_v15 }
   0xb   :  { %639 = vmatprep.mubr.msk.f32.mxu0 %vm32_vm0, %v22_v7  ;;  %655 = vmatpush3.msra.mxu1 %v170_v15 }
   0xc   :  { %668 = vmatprep.subr.mxu0 %v312_v16 }
   0xd   :  { %669 = vmatpush3.msra.mxu0 %v312_v16 }
   0xe   :  { %640 = vmatmul.mubr.msk.f32.gmra.mxu0 %vm32_vm0, %v23_v8  ;;  %670 = vmatprep.subr.mxu0 %v311_v17 }
   0xf   :  { %642 = vmatprep.mubr.msk.f32.mxu0 %vm32_vm0, %v24_v9  ;;  %671 = vmatpush3.msra.mxu0 %v311_v17 }
  0x12   :  { %643 = vmatmul.mubr.msk.f32.gmra.mxu0 %vm32_vm0, %v25_v10 }
  0x13   :  { %645 = vmatprep.mubr.msk.f32.mxu0 %vm32_vm0, %v26_v11 }
  0x16   :  { %646 = vmatmul.mubr.msk.f32.gmra.mxu0 %vm32_vm0, %v27_v12 }
  0xca   :  { %v638_v18 = vpop.f32.mrf.mxu0 }
  0xcb   :  { %v163_v21 = vmax.f32 %v638_v18, 0.0 }
  0xcc   :  { %v123_v19 = vpop.f32.mrf.mxu0 }
  0xcd   :  { %v162_v20 = vmax.f32 %v123_v19, 0.0 }
  0xce   :  { %v641_v22 = vpop.f32.mrf.mxu0 }
  0xcf   :  { %656 = vmatprep.mubr.msk.f32.mxu1 %vm32_vm0, %v162_v20  ;;  %v165_v25 = vmax.f32 %v641_v22, 0.0 }
  0xd0   :  { %v133_v23 = vpop.f32.mrf.mxu0  ;;  %657 = vmatmul.mubr.msk.f32.vlgmr.msra.gmra.mxu1 %vm32_vm0, %v163_v21 }
  0xd1   :  { %v164_v24 = vmax.f32 %v133_v23, 0.0 }
  0xd2   :  { %v644_v26 = vpop.f32.mrf.mxu0 }
  0xd3   :  { %659 = vmatprep.mubr.msk.f32.mxu1 %vm32_vm0, %v164_v24  ;;  %v167_v29 = vmax.f32 %v644_v26, 0.0 }
  0xd4   :  { %v143_v27 = vpop.f32.mrf.mxu0  ;;  %660 = vmatmul.mubr.msk.f32.gmra.mxu1 %vm32_vm0, %v165_v25 }
  0xd5   :  { %v166_v28 = vmax.f32 %v143_v27, 0.0 }
  0xd6   :  { %v647_v30 = vpop.f32.mrf.mxu0 }
  0xd7   :  { %662 = vmatprep.mubr.msk.f32.mxu1 %vm32_vm0, %v166_v28  ;;  %v169_v33 = vmax.f32 %v647_v30, 0.0 }
  0xd8   :  { %v153_v31 = vpop.f32.mrf.mxu0  ;;  %663 = vmatmul.mubr.msk.f32.gmra.mxu1 %vm32_vm0, %v167_v29 }
  0xd9   :  { %v168_v32 = vmax.f32 %v153_v31, 0.0 }
  0xdb   :  { %665 = vmatprep.mubr.msk.f32.mxu1 %vm32_vm0, %v168_v32 }
  0xdc   :  { %666 = vmatmul.mubr.msk.f32.gmra.mxu1 %vm32_vm0, %v169_v33 }
  0xdd   :  { %700 = vmatprep.mubr.msk.f32.mxu1 %vm445_vm2, %v443_v50 }
 0x190   :  { %v658_v34 = vpop.f32.mrf.mxu1 }
 0x191   :  { %v304_v37 = vmax.f32 %v658_v34, 0.0 }
 0x192   :  { %v264_v35 = vpop.f32.mrf.mxu1 }
 0x193   :  { %v303_v36 = vmax.f32 %v264_v35, 0.0 }
 0x194   :  { %v661_v38 = vpop.f32.mrf.mxu1 }
 0x195   :  { %672 = vmatprep.mubr.msk.f32.mxu0 %vm313_vm1, %v303_v36  ;;  %v306_v41 = vmax.f32 %v661_v38, 0.0 }
 0x196   :  { %v274_v39 = vpop.f32.mrf.mxu1  ;;  %673 = vmatmul.mubr.msk.f32.vlgmr.msra.gmra.mxu0 %vm313_vm1, %v304_v37 }
 0x197   :  { %v305_v40 = vmax.f32 %v274_v39, 0.0 }
 0x198   :  { %v664_v42 = vpop.f32.mrf.mxu1 }
 0x199   :  { %675 = vmatprep.mubr.msk.f32.mxu0 %vm313_vm1, %v305_v40  ;;  %v308_v45 = vmax.f32 %v664_v42, 0.0 }
 0x19a   :  { %v284_v43 = vpop.f32.mrf.mxu1  ;;  %676 = vmatmul.mubr.msk.f32.gmra.mxu0 %vm313_vm1, %v306_v41 }
 0x19b   :  { %v307_v44 = vmax.f32 %v284_v43, 0.0 }
 0x19c   :  { %v667_v46 = vpop.f32.mrf.mxu1 }
 0x19d   :  { %678 = vmatprep.mubr.msk.f32.mxu0 %vm313_vm1, %v307_v44  ;;  %v310_v49 = vmax.f32 %v667_v46, 0.0 }
 0x19e   :  { %v294_v47 = vpop.f32.mrf.mxu1  ;;  %679 = vmatmul.mubr.msk.f32.gmra.mxu0 %vm313_vm1, %v308_v45 }
 0x19f   :  { %v309_v48 = vmax.f32 %v294_v47, 0.0 }
 0x1a1   :  { %681 = vmatprep.mubr.msk.f32.mxu0 %vm313_vm1, %v309_v48 }
 0x1a2   :  { %682 = vmatmul.mubr.msk.f32.gmra.mxu0 %vm313_vm1, %v310_v49 }
 0x256   :  { %v674_v51 = vpop.f32.mrf.mxu0 }
 0x258   :  { %v404_v52 = vpop.f32.mrf.mxu0 }
 0x25a   :  { %v677_v53 = vpop.f32.mrf.mxu0 }
 0x25c   :  { %v414_v54 = vpop.f32.mrf.mxu0 }
 0x25e   :  { %v680_v55 = vpop.f32.mrf.mxu0 }
 0x260   :  { %v424_v56 = vpop.f32.mrf.mxu0 }
 0x262   :  { %v683_v57 = vpop.f32.mrf.mxu0 }
 0x263   :  { %684 = vmatprep.subr.mxu1 %v683_v57 }
 0x264   :  { %v434_v58 = vpop.f32.mrf.mxu0  ;;  %685 = vmatpush3.msra.mxu1 %v683_v57 }
 0x265   :  { %686 = vmatprep.subr.mxu1 %v434_v58 }
 0x266   :  { %687 = vmatpush3.msra.mxu1 %v434_v58 }
 0x267   :  { %688 = vmatprep.subr.mxu1 %v680_v55 }
 0x268   :  { %689 = vmatpush3.msra.mxu1 %v680_v55 }
 0x269   :  { %690 = vmatprep.subr.mxu1 %v424_v56 }
 0x26a   :  { %691 = vmatpush3.msra.mxu1 %v424_v56 }
 0x26b   :  { %692 = vmatprep.subr.mxu1 %v677_v53 }
 0x26c   :  { %693 = vmatpush3.msra.mxu1 %v677_v53 }
 0x26d   :  { %694 = vmatprep.subr.mxu1 %v414_v54 }
 0x26e   :  { %695 = vmatpush3.msra.mxu1 %v414_v54 }
 0x26f   :  { %696 = vmatprep.subr.mxu1 %v674_v51 }
 0x270   :  { %697 = vmatpush3.msra.mxu1 %v674_v51 }
 0x271   :  { %698 = vmatprep.subr.mxu1 %v404_v52 }
 0x272   :  { %699 = vmatpush3.msra.mxu1 %v404_v52 }
 0x273   :  { %701 = vmatmul.mubr.msk.f32.vlgmr.msra.gmra.mxu1 %vm445_vm2, %v444_v59 }
 0x333   :  { %v702_v62 = vpop.f32.mrf.mxu1 }
 0x334   :  { %v531_v1 = vsel %vm529_vm3, %v702_v62, -1e+30 }
 0x335   :  { %v518_v63 = vpop.f32.mrf.mxu1 }
 0x336   :  { %v530_v0 = vsel %vm529_vm3, %v518_v63, -1e+30 }
 0x337   :  { %532 = vmax.xlane.f32.xlu0 %v530_v0 }
 0x33b   :  { %534 = vmax.xlane.f32.xlu0 %v531_v1 }
 0x3c0   :  { %v533_v2 = vpop.xlane.xlu0 %532 }
 0x3c1   :  { %v536_v3 = vsub.f32 %v530_v0, %v533_v2 }
 0x3c3   :  { %v538_v4 = vmul.f32 1.442695, %v536_v3 }
 0x3c4   :  { %v535_v5 = vpop.xlane.xlu0 %534 }
 0x3c5   :  { %v537_v6 = vsub.f32 %v531_v1, %v535_v5  ;;  %703 = vpow2.f32 %v538_v4 }
 0x3c7   :  { %v540_v7 = vmul.f32 1.442695, %v537_v6 }
 0x3c9   :  { %705 = vpow2.f32 %v540_v7 }
 0x3d2   :  { %v704_v8 = vpop.eup %703 }
 0x3d3   :  { %542 = vadd.xlane.f32.xlu1 %v704_v8 }
 0x3d6   :  { %v706_v9 = vpop.eup %705 }
 0x3d7   :  { %544 = vadd.xlane.f32.xlu1 %v706_v9 }
 0x45c   :  { %v543_v10 = vpop.xlane.xlu1 %542 }
 0x45d   :  { %707 = vlog2.f32 %v543_v10 }
 0x460   :  { %v545_v11 = vpop.xlane.xlu1 %544 }
 0x461   :  { %709 = vlog2.f32 %v545_v11 }
 0x46a   :  { %v708_v12 = vpop.eup %707 }
 0x46b   :  { %v547_v13 = vmul.f32 0.6931472, %v708_v12 }
 0x46d   :  { %v550_v14 = vsub.f32 %v536_v3, %v547_v13 }
 0x46e   :  { %v710_v15 = vpop.eup %709 }
 0x46f   :  { %552 = vst [vmem:[%s838_s5] sm:$0xff] %v550_v14  ;;  %v549_v16 = vmul.f32 0.6931472, %v710_v15 }
 0x471   :  { %v551_v17 = vsub.f32 %v537_v6, %v549_v16 }
 0x473   :  { %553 = vst [vmem:[%s838_s5 + $0x8] sm:$0xff] %v551_v17 }

</bundles_post_ra>
